<compile_context>
chip_gen: v7x
topology: tpu7x:2x2x1
jax: 0.10.0
libtpu: 0.0.40
codegen_flags: <defaults>
</compile_context>

<pallas_src>
import functools

import jax
import jax.numpy as jnp
from jax.experimental import pallas as pl
from jax.experimental.pallas import tpu as pltpu


# ---------------------------------------------------------------------------
# Kernels
# ---------------------------------------------------------------------------
def _ln_pointwise_kernel(x_ref, g_ref, b_ref, w_ref, o_ref, *, eps):
    """Fused channels-first LayerNorm + 1x1x1 conv on a (C_in, TILE_N) tile."""
    x = x_ref[0].astype(jnp.float32)                         # (C_in, TILE_N)
    mean = jnp.mean(x, axis=0, keepdims=True)                # (1, TILE_N)
    centered = x - mean
    var = jnp.mean(centered * centered, axis=0, keepdims=True)
    xn = centered * jax.lax.rsqrt(var + eps)
    xn = g_ref[...].astype(jnp.float32) * xn + b_ref[...].astype(jnp.float32)
    out = jnp.dot(w_ref[...].astype(jnp.float32), xn,
                  preferred_element_type=jnp.float32)        # (C_out, TILE_N)
    o_ref[0] = out.astype(o_ref.dtype)


def _ln_kernel(x_ref, g_ref, b_ref, o_ref, *, eps):
    """Channels-first LayerNorm on a (C, TILE_N) tile."""
    x = x_ref[0].astype(jnp.float32)
    mean = jnp.mean(x, axis=0, keepdims=True)
    centered = x - mean
    var = jnp.mean(centered * centered, axis=0, keepdims=True)
    xn = centered * jax.lax.rsqrt(var + eps)
    xn = g_ref[...].astype(jnp.float32) * xn + b_ref[...].astype(jnp.float32)
    o_ref[0] = xn.astype(o_ref.dtype)


def _pointwise_kernel(x_ref, w_ref, o_ref):
    """Channel-mixing matmul (pointwise conv) on a (C_in, TILE_N) tile."""
    out = jnp.dot(w_ref[...].astype(jnp.float32), x_ref[0].astype(jnp.float32),
                  preferred_element_type=jnp.float32)
    o_ref[0] = out.astype(o_ref.dtype)


# ---------------------------------------------------------------------------
# Wrapper helpers
# ---------------------------------------------------------------------------
def _pad_lanes(x_bcn):
    """Pad the voxel (lane) axis to a multiple of 128 only when required."""
    n = x_bcn.shape[2]
    pad = (-n) % 128
    if pad:
        x_bcn = jnp.pad(x_bcn, ((0, 0), (0, 0), (0, pad)))
    return x_bcn, n


def _tile_n(n, c_rows, itemsize, target_bytes=2 * 1024 * 1024):
    """Largest multiple-of-128 divisor of n with one (C, TILE_N) buffer ~target_bytes."""
    cap = max(128, (target_bytes // max(1, c_rows * itemsize)) // 128 * 128)
    tile = min(n, cap)
    while n % tile:
        tile -= 128
    return tile


def _run_channel_kernel(kernel, x_bcn, side_inputs, c_out, out_dtype):
    """Run a per-(batch, voxel-tile) kernel over a lane-dense (B, C, N) tensor."""
    b, c, n = x_bcn.shape
    tile = _tile_n(n, max(c, c_out), jnp.dtype(out_dtype).itemsize)
    grid = (b, n // tile)
    side_specs = [
        pl.BlockSpec(a.shape, lambda i, j, nd=a.ndim: (0,) * nd) for a in side_inputs
    ]
    return pl.pallas_call(
        kernel,
        out_shape=jax.ShapeDtypeStruct((b, c_out, n), out_dtype),
        grid=grid,
        in_specs=[pl.BlockSpec((1, c, tile), lambda i, j: (i, 0, j))] + side_specs,
        out_specs=pl.BlockSpec((1, c_out, tile), lambda i, j: (i, 0, j)),
        compiler_params=pltpu.CompilerParams(
            dimension_semantics=("parallel", "parallel")),
    )(x_bcn, *side_inputs)


# ---------------------------------------------------------------------------
# TransLayer forward
# ---------------------------------------------------------------------------
def trans_layer_forward(x, ln_weight, ln_bias, conv_weight, *, down_sample=1, eps=1e-6):
    """x: (B, C_in, D, H, W); conv_weight: (C_out, C_in, k, k, k); bias-free conv."""
    b, c, d, h, w = x.shape
    c_out = conv_weight.shape[0]
    gamma = ln_weight.reshape(c, 1).astype(x.dtype)
    beta = ln_bias.reshape(c, 1).astype(x.dtype)
    n = d * h * w

    if down_sample == 1:
        w2d = conv_weight.reshape(c_out, c)
        x_bcn, n_orig = _pad_lanes(x.reshape(b, c, n))
        out = _run_channel_kernel(
            functools.partial(_ln_pointwise_kernel, eps=eps),
            x_bcn, [gamma, beta, w2d], c_out, x.dtype)
        if out.shape[2] != n_orig:
            out = out[:, :, :n_orig]
        return out.reshape(b, c_out, d, h, w)

    # down_sample != 1 : LayerNorm kernel, then fold each 2x2x2 neighborhood into
    # the channel axis so the stride-2 conv becomes a pointwise channel matmul.
    x_bcn, n_orig = _pad_lanes(x.reshape(b, c, n))
    xn = _run_channel_kernel(
        functools.partial(_ln_kernel, eps=eps), x_bcn, [gamma, beta], c, x.dtype)
    if xn.shape[2] != n_orig:
        xn = xn[:, :, :n_orig]
    xn = xn.reshape(b, c, d, h, w)
    # TODO(synk): the space-to-depth rearrangement is an XLA transpose in the
    # wrapper (one extra HBM pass) rather than a fused in-kernel gather.
    d2, h2, w2 = d // 2, h // 2, w // 2
    xs = xn.reshape(b, c, d2, 2, h2, 2, w2, 2)
    xs = xs.transpose(0, 1, 3, 5, 7, 2, 4, 6).reshape(b, c * 8, d2 * h2 * w2)
    w2d = conv_weight.reshape(c_out, c * 8)
    xs, n2 = _pad_lanes(xs)
    out = _run_channel_kernel(_pointwise_kernel, xs, [w2d], c_out, x.dtype)
    if out.shape[2] != n2:
        out = out[:, :, :n2]
    return out.reshape(b, c_out, d2, h2, w2)


class TransLayer:
    """JAX/Pallas counterpart of the PyTorch TransLayer module."""

    def __init__(self, in_channels, out_channels, down_sample=1, *, key=None,
                 dtype=jnp.float32):
        self.in_channels = in_channels
        self.out_channels = out_channels
        self.down_sample = down_sample
        self.eps = 1e-6
        self.ln_weight = jnp.ones((in_channels,), dtype)
        self.ln_bias = jnp.zeros((in_channels,), dtype)
        k = 1 if down_sample == 1 else 2
        key = jax.random.PRNGKey(0) if key is None else key
        fan_in = in_channels * k ** 3
        self.conv_weight = (
            jax.random.normal(key, (out_channels, in_channels, k, k, k), dtype)
            / jnp.sqrt(float(fan_in)))

    def __call__(self, x):
        return trans_layer_forward(x, self.ln_weight, self.ln_bias, self.conv_weight,
                                   down_sample=self.down_sample, eps=self.eps)


# ---------------------------------------------------------------------------
# Pure-JAX reference for verification
# ---------------------------------------------------------------------------
def _reference(x, ln_w, ln_b, conv_w, down_sample, eps):
    mean = x.mean(axis=1, keepdims=True)
    var = ((x - mean) ** 2).mean(axis=1, keepdims=True)
    xn = (x - mean) / jnp.sqrt(var + eps)
    xn = ln_w[None, :, None, None, None] * xn + ln_b[None, :, None, None, None]
    stride = (1, 1, 1) if down_sample == 1 else (2, 2, 2)
    return jax.lax.conv_general_dilated(
        xn, conv_w, window_strides=stride, padding="VALID",
        dimension_numbers=("NCDHW", "OIDHW", "NCDHW"))


if __name__ == "__main__":
    key = jax.random.PRNGKey(0)
    kx, kw1, kw2, kg, kb = jax.random.split(key, 5)
    # (B, C, D, H, W) volumetric channels-first input, as used by the ConvNeXt block.
    x = jax.random.normal(kx, (2, 4, 8, 8, 8), dtype=jnp.float32)

    # down_sample == 1 : fused LayerNorm + 1x1x1 conv (single pallas_call).
    layer1 = TransLayer(4, 8, down_sample=1, key=kw1)
    layer1.ln_weight = 1.0 + 0.1 * jax.random.normal(kg, (4,), jnp.float32)
    layer1.ln_bias = 0.1 * jax.random.normal(kb, (4,), jnp.float32)
    y1 = jax.block_until_ready(layer1(x))
    ref1 = _reference(x, layer1.ln_weight, layer1.ln_bias, layer1.conv_weight,
                      1, layer1.eps)
    assert y1.shape == (2, 8, 8, 8, 8)
    assert jnp.allclose(y1, ref1, atol=1e-4, rtol=1e-3), \
        float(jnp.max(jnp.abs(y1 - ref1)))

    # down_sample != 1 : LayerNorm kernel + space-to-depth + channel-matmul kernel.
    layer2 = TransLayer(4, 8, down_sample=2, key=kw2)
    y2 = jax.block_until_ready(layer2(x))
    ref2 = _reference(x, layer2.ln_weight, layer2.ln_bias, layer2.conv_weight,
                      2, layer2.eps)
    assert y2.shape == (2, 8, 4, 4, 4)
    assert jnp.allclose(y2, ref2, atol=1e-4, rtol=1e-3), \
        float(jnp.max(jnp.abs(y2 - ref2)))

    print("KERNEL_OK")
</pallas_src>

<mosaic_0001>
module attributes {stable_mosaic.version = 11 : i64} {
  func.func @_ln_pointwise_kernel(%arg0: i32, %arg1: i32, %arg2: memref<1x4x512xf32, #tpu.memory_space<vmem>>, %arg3: memref<4x1xf32, #tpu.memory_space<vmem>>, %arg4: memref<4x1xf32, #tpu.memory_space<vmem>>, %arg5: memref<8x4xf32, #tpu.memory_space<vmem>>, %arg6: memref<1x8x512xf32, #tpu.memory_space<vmem>>) attributes {dimension_semantics = [#tpu.dimension_semantics<parallel>, #tpu.dimension_semantics<parallel>], iteration_bounds = array<i64: 2, 1>, scalar_prefetch = 0 : i64, scratch_operands = 0 : i64, tpu.core_type = #tpu.core_type<tc>, window_params = [{transform_indices = @transform_0, window_bounds = array<i64: 1, 4, 512>}, {pipeline_mode = #tpu.pipeline_mode<synchronous>, transform_indices = @transform_1, window_bounds = array<i64: 4, 1>}, {pipeline_mode = #tpu.pipeline_mode<synchronous>, transform_indices = @transform_2, window_bounds = array<i64: 4, 1>}, {pipeline_mode = #tpu.pipeline_mode<synchronous>, transform_indices = @transform_3, window_bounds = array<i64: 8, 4>}, {transform_indices = @transform_4, window_bounds = array<i64: 1, 8, 512>}]} {
    %c0 = arith.constant 0 : index
    %c0_0 = arith.constant 0 : index
    %c0_1 = arith.constant 0 : index
    %0 = vector.load %arg2[%c0, %c0_0, %c0_1] : memref<1x4x512xf32, #tpu.memory_space<vmem>>, vector<1x4x512xf32>
    %1 = vector.shape_cast %0 : vector<1x4x512xf32> to vector<4x512xf32>
    %cst = arith.constant dense<0.000000e+00> : vector<512xf32>
    %2 = vector.multi_reduction <add>, %1, %cst [0] : vector<4x512xf32> to vector<512xf32>
    %3 = vector.shape_cast %2 : vector<512xf32> to vector<1x512xf32>
    %cst_2 = arith.constant 4.000000e+00 : f32
    %4 = vector.broadcast %cst_2 : f32 to vector<1x512xf32>
    %5 = arith.divf %3, %4 : vector<1x512xf32>
    %6 = vector.broadcast %5 : vector<1x512xf32> to vector<4x512xf32>
    %7 = arith.subf %1, %6 : vector<4x512xf32>
    %8 = arith.mulf %7, %7 : vector<4x512xf32>
    %cst_3 = arith.constant dense<0.000000e+00> : vector<512xf32>
    %9 = vector.multi_reduction <add>, %8, %cst_3 [0] : vector<4x512xf32> to vector<512xf32>
    %10 = vector.shape_cast %9 : vector<512xf32> to vector<1x512xf32>
    %cst_4 = arith.constant 4.000000e+00 : f32
    %11 = vector.broadcast %cst_4 : f32 to vector<1x512xf32>
    %12 = arith.divf %10, %11 : vector<1x512xf32>
    %cst_5 = arith.constant 9.99999997E-7 : f32
    %13 = vector.broadcast %cst_5 : f32 to vector<1x512xf32>
    %14 = arith.addf %12, %13 : vector<1x512xf32>
    %15 = math.rsqrt %14 : vector<1x512xf32>
    %16 = vector.broadcast %15 : vector<1x512xf32> to vector<4x512xf32>
    %17 = arith.mulf %7, %16 : vector<4x512xf32>
    %c0_6 = arith.constant 0 : index
    %c0_7 = arith.constant 0 : index
    %18 = vector.load %arg3[%c0_6, %c0_7] : memref<4x1xf32, #tpu.memory_space<vmem>>, vector<4x1xf32>
    %19 = vector.broadcast %18 : vector<4x1xf32> to vector<4x512xf32>
    %20 = arith.mulf %19, %17 : vector<4x512xf32>
    %c0_8 = arith.constant 0 : index
    %c0_9 = arith.constant 0 : index
    %21 = vector.load %arg4[%c0_8, %c0_9] : memref<4x1xf32, #tpu.memory_space<vmem>>, vector<4x1xf32>
    %22 = vector.broadcast %21 : vector<4x1xf32> to vector<4x512xf32>
    %23 = arith.addf %20, %22 : vector<4x512xf32>
    %c0_10 = arith.constant 0 : index
    %c0_11 = arith.constant 0 : index
    %24 = vector.load %arg5[%c0_10, %c0_11] : memref<8x4xf32, #tpu.memory_space<vmem>>, vector<8x4xf32>
    %cst_12 = arith.constant dense<0.000000e+00> : vector<8x512xf32>
    %25 = tpu.matmul %24, %23, %cst_12 {dimension_numbers = #tpu.dot_dimension_numbers<[1], [0], [0], [1], [0, 0, 1, 1], [], []>} : vector<8x4xf32>, vector<4x512xf32>, vector<8x512xf32> -> vector<8x512xf32>
    %c0_13 = arith.constant 0 : index
    %c0_14 = arith.constant 0 : index
    %c0_15 = arith.constant 0 : index
    %26 = vector.load %arg6[%c0_13, %c0_14, %c0_15] : memref<1x8x512xf32, #tpu.memory_space<vmem>>, vector<1x8x512xf32>
    %27 = vector.shape_cast %26 : vector<1x8x512xf32> to vector<8x512xf32>
    %28 = vector.shape_cast %25 : vector<8x512xf32> to vector<1x8x512xf32>
    tpu.vector_store %arg6[%c0_13, %c0_14, %c0_15], %28 {strides = array<i32>} : memref<1x8x512xf32, #tpu.memory_space<vmem>>, vector<1x8x512xf32>,
    return
  }
  func.func @transform_0(%arg0: i32, %arg1: i32) -> (i32, i32, i32) {
    %c0_i32 = arith.constant 0 : i32
    %c0_i32_0 = arith.constant 0 : i32
    return %arg0, %c0_i32, %arg1 : i32, i32, i32
  }
  func.func @transform_1(%arg0: i32, %arg1: i32) -> (i32, i32) {
    %c0_i32 = arith.constant 0 : i32
    %c0_i32_0 = arith.constant 0 : i32
    %c0_i32_1 = arith.constant 0 : i32
    return %c0_i32, %c0_i32_0 : i32, i32
  }
  func.func @transform_2(%arg0: i32, %arg1: i32) -> (i32, i32) {
    %c0_i32 = arith.constant 0 : i32
    %c0_i32_0 = arith.constant 0 : i32
    %c0_i32_1 = arith.constant 0 : i32
    return %c0_i32, %c0_i32_0 : i32, i32
  }
  func.func @transform_3(%arg0: i32, %arg1: i32) -> (i32, i32) {
    %c0_i32 = arith.constant 0 : i32
    %c0_i32_0 = arith.constant 0 : i32
    %c0_i32_1 = arith.constant 0 : i32
    return %c0_i32, %c0_i32_0 : i32, i32
  }
  func.func @transform_4(%arg0: i32, %arg1: i32) -> (i32, i32, i32) {
    %c0_i32 = arith.constant 0 : i32
    %c0_i32_0 = arith.constant 0 : i32
    return %arg0, %c0_i32, %arg1 : i32, i32, i32
  }
}

</mosaic_0001>

<bundles_post_ra>
// kernel: tpu_custom_call.1
= control target key start
LH: loop header
LB: loop body
LE: loop exit
PB: predicated region body
PF: predicated region fallthrough
CT: control target
= control target key end

     0   :  { %9 = vsyncpa [#allocation3], 0  ;;  %s1069_s0 = inlined_call_operand.hbm [shape: f32[2,4,512], index: 0, kind: input, shape index: {}]   ;;  %s1070_s1 = inlined_call_operand.vmem [shape: f32[4,1], index: 1, kind: input, shape index: {}]   ;;  %s1071_s2 = inlined_call_operand.vmem [shape: f32[4,1], index: 2, kind: input, shape index: {}]   ;;  %s1072_s3 = inlined_call_operand.vmem [shape: f32[8,4], index: 3, kind: input, shape index: {}]   ;;  %s1073_s4 = inlined_call_operand.hbm [shape: f32[2,8,512], index: 4, kind: output, shape index: {}]  }
   0x1   :  { %11 = vsyncpa [#allocation3 + $0x1], 0 }
   0x2   :  { %12 = vsyncpa [#allocation4], 0 }
   0x3   :  { %14 = vsyncpa [#allocation4 + $0x1], 0  ;;  %s875_s15 = smov 0   ;;  %s877_s16 = smov 0  }
   0x4   :  { %s879_s17 = smov 0   ;;  %s881_s18 = smov 0  }
   0x5   :  { %s883_s19 = smov 0   ;;  %s885_s20 = smov 0  }
   0x6 LB: > { %s634_s21 = sadd.s32 4294967295, %s844_s20   ;;  %s635_s22 = sadd.s32 4294967294, %s844_s20   ;;  %s844_s20 = sphi %s885_s20, %s20_s20   ;;  %s840_s19 = sphi %s883_s19, %s1089_s19   ;;  %s836_s18 = sphi %s881_s18, %s1088_s18   ;;  %s832_s17 = sphi %s879_s17, %s1087_s17   ;;  %s828_s16 = sphi %s877_s16, %s1086_s16   ;;  %s824_s15 = sphi %s875_s15, %s1085_s15  }
   0x7   : > { %s32_s23 = sadd.s32 1, %s840_s19  ;;  %s41_s24 = sadd.s32 1, %s832_s17 }
   0x8   : > { %p34_p0 = scmp.ge.s32.totalorder %s32_s23, 2  ;;  %p48_p1 = scmp.ne.s32.totalorder %s832_s17, %s828_s16 }
   0x9   : > { %p49_p2 = scmp.eq.s32.totalorder %s844_s20, 0  ;;  %p54_p3 = scmp.ne.s32.totalorder %s828_s16, %s824_s15 }
   0xa   : > { %s1091_s23 = smov (%p34_p0, %s32_s23), 0  ;;  %p55_p5 = scmp.eq.s32.totalorder %s634_s21, 0 }
   0xb   : > { %p916_p4 = por %p49_p2, %p48_p1  ;;  %s36_s26 = ssub.s32 %s840_s19, %s1091_s23 }
   0xc   : > { %p143_p6 = scmp.eq.s32.totalorder %s634_s21, 1  ;;  %p39_p7 = scmp.eq.s32.totalorder %s36_s26, 0 }
   0xd   : > { %p922_p8 = por %p55_p5, %p54_p3  ;;  %p149_p10 = scmp.eq.s32.totalorder %s635_s22, 1 }
   0xe   : > { %p926_p9 = por %p143_p6, %p48_p1  ;;  %p669_p13 = scmp.lt.s32.totalorder %s844_s20, 2 }
   0xf   : > { %s931_s29 = scalar_select %p39_p7, %s832_s17, %s41_s24  }
  0x10   : > { %s1077_s28 = scalar_select %p926_p9, 1, 0 }
  0x11   : > { %p933_p11 = por %p149_p10, %p54_p3  ;;  %s178_s5 = sand.u32 1, %s832_s17  }
  0x12   : > { %s638_s6 = sshll.u32 %s178_s5, 4  ;;  %s655_s7 = sshll.u32 %s840_s19, 8 }
  0x13   : > { %s1078_s30 = scalar_select %p933_p11, 1, 0 }
  0x14   : > { %s944_s10 = scalar_lea.hbm %s1069_s0, %s655_s7  ;;  %s182_s11 = scalar_lea.vmem [#allocation2], %s638_s6 }
  0x15   : > { %s192_s12 = sshll.u32 %s182_s11, 4  ;;  %p950_p0 = pnand %p669_p13, %p916_p4  ;;  %s946_s12 = int_to_ptr.vmem [resolvable:$true] %s192_s12 }
  0x16   : > { %s179_s14 = scalar_lea.sflag [#allocation3], %s178_s5  ;;  %s732_s21 = scalar_lea.hbm %s944_s10, 256 }
  0x17   : > { %p733_p3 = scmp.ne.s32.totalorder %s944_s10, %s732_s21  ;;  %p734_p5 = pneg %p950_p0 }
  0x18   : > { %s737_s25 = scalar_lea.hbm %s1069_s0, 512  ;;  %p738_p4 = scmp.lt.u32.totalorder %s944_s10, %s1069_s0 }
  0x19   : > { %p735_p6 = pnand %p734_p5, %p733_p3  ;;  %p739_p10 = scmp.lt.u32.totalorder %s737_s25, %s732_s21 }
  0x1a   : > { %p741_p12 = scmp.lt.u32.totalorder %s732_s21, %s944_s10 }
  0x1b   : > { %p736_p7 = pneg %p735_p6  ;;  %p740_p13 = por %p739_p10, %p738_p4 }
  0x1d   : > { %p742_p1 = por %p741_p12, %p740_p13 }
  0x1f   : > { %p743_p2 = pnand %p742_p1, %p736_p7 }
  0x21   : > { %746 = shalt.err (!%p743_p2)
}
  0x22   : > { %s747_s5 = scalar_lea.vmem %s946_s12, 256  ;;  %s846_s7 = smov [#allocation2]  }
  0x23   : > { %p748_p3 = scmp.ne.s32.totalorder %s946_s12, %s747_s5  ;;  %s752_s8 = sshll.u32 %s846_s7, 4  ;;  %s753_s8 = int_to_ptr.vmem [resolvable:$false] %s752_s8 }
  0x24   : > { %s754_s9 = scalar_lea.vmem %s753_s8, 512  ;;  %p755_p9 = scmp.lt.s32.totalorder %s946_s12, %s753_s8 }
  0x25   : > { %p750_p6 = pnand %p748_p3, %p734_p5  ;;  %p756_p4 = scmp.lt.s32.totalorder %s754_s9, %s747_s5 }
  0x27   : > { %p751_p11 = pneg %p750_p6  ;;  %p757_p10 = por %p756_p4, %p755_p9 }
  0x29   : > { %p758_p12 = pnand %p757_p10, %p751_p11 }
  0x2b   : > { %761 = shalt.err (!%p758_p12)
}
  0x2c   : > { %664 = dma.hbm_to_vmem [thread:$0]  (!%p950_p0), %s944_s10, 256, %s946_s12, %s179_s14  }
  0x2d   : > { %p1080_p1 = scmp.lt.s32.totalorder %s844_s20, 3  ;;  %p1081_p2 = scmp.ge.s32.totalorder %s844_s20, 1 }
  0x2f   : > { %p198_p5 = pnand %p1081_p2, %p1080_p1 }
  0x30   : > { %s986_s11 = sand.u32 (!%p198_p5), 1, %s828_s16  }
  0x31   : > { %201 = sbr.rel (%p198_p5) target bundleno = 422 (0x1a6), region = 36  ;;  %s642_s21 = sshll.u32 (!%p198_p5), %s986_s11, 4 }
  0x32   : > { %s204_s22 = scalar_lea.sflag (!%p198_p5), [#allocation3], %s986_s11  ;;  %s207_s24 = scalar_lea.vmem (!%p198_p5), [#allocation2], %s642_s21 }
  0x38   : > { %815 = dma.done.wait (%p922_p8), %s204_s22, 256  }
  0x39   : > { %817 = vsyncadd (%p922_p8), %s204_s22, 4294967040  ;;  %v847_v0 = vmov 0   ;;  %v344_v1 = vld [vmem:[%s1070_s1] sm:$0xf]  ;;  %v848_v3 = vmov 0.0   ;;  %v235_v5 = vld [vmem:[%s207_s24 + $0x8] sm:$0xff] }
  0x3a   : > { %721 = vset.pattern.permute.xlu0 %v847_v0  ;;  %v360_v2 = vld [vmem:[%s1071_s2] sm:$0xf]  ;;  %451 = vmatprep.mubr.f32.mxu0 %v848_v3  ;;  %vm242_vm0 = vcmask 1043456   ;;  %v239_v7 = vcombine.high %v235_v5, %v235_v5  ;;  %vm371_vm1 = vcmask 31744   ;;  %s643_s26 = sshll.u32 %s986_s11, 5  ;;  %s656_s7 = sshll.u32 %s836_s18, 9 }
  0x3b   : > { %347 = vperm.xlu0 %721, %v344_v1   ;;  %522 = vmatprep.mubr.f32.mxu1 %v848_v3  ;;  %v234_v4 = vld [vmem:[%s207_s24] sm:$0xff]  ;;  %v257_v10 = vsel %vm242_vm0, %v235_v5, 0.0  ;;  %s231_s6 = scalar_lea.vmem [#allocation5], %s643_s26  ;;  %s1022_s21 = scalar_lea.hbm %s1073_s4, %s656_s7 }
  0x3c   : > { %v238_v6 = vcombine.high %v234_v4, %v234_v4  ;;  %v243_v8 = vsel %vm242_vm0, %v234_v4, 0.0  ;;  %v264_v11 = vsel %vm242_vm0, %v239_v7, 0.0  ;;  %v258_v14 = vrot.slane %v257_v10, 4  ;;  %s550_s5 = sshll.u32 %s231_s6, 4  ;;  %s534_s22 = scalar_lea.sflag [#allocation4], %s986_s11  ;;  %s1017_s5 = int_to_ptr.vmem [resolvable:$true] %s550_s5 }
  0x3d   : > { %v244_v12 = vrot.slane %v243_v8, 4  ;;  %v265_v15 = vrot.slane %v264_v11, 4  ;;  %s762_s18 = scalar_lea.vmem %s1017_s5, 512  ;;  %p1082_p9 = scmp.ne.s32.totalorder %s1077_s28, 0 }
  0x3e   : > { %v250_v9 = vsel %vm242_vm0, %v238_v6, 0.0  ;;  %v259_v18 = vadd.f32 %v258_v14, %v257_v10  ;;  %p763_p8 = scmp.ne.s32.totalorder %s1017_s5, %s762_s18  ;;  %s849_s24 = smov [#allocation5]  }
  0x3f   : > { %363 = vperm.xlu0 %721, %v360_v2   ;;  %v251_v13 = vrot.slane %v250_v9, 4  ;;  %v245_v16 = vadd.f32 %v244_v12, %v243_v8  ;;  %v266_v19 = vadd.f32 %v265_v15, %v264_v11  ;;  %s766_s10 = sshll.u32 %s849_s24, 4  ;;  %s767_s10 = int_to_ptr.vmem [resolvable:$false] %s766_s10 }
  0x40   : > { %v260_v22 = vrot.slane %v259_v18, 2  ;;  %p764_p11 = pnand %p763_p8, %p1082_p9  ;;  %s768_s12 = scalar_lea.vmem %s767_s10, 1024 }
  0x41   : > { %v252_v17 = vadd.f32 %v251_v13, %v250_v9  ;;  %v246_v20 = vrot.slane %v245_v16, 2  ;;  %v267_v23 = vrot.slane %v266_v19, 2  ;;  %p769_p7 = scmp.lt.s32.totalorder %s1017_s5, %s767_s10  ;;  %p770_p13 = scmp.lt.s32.totalorder %s768_s12, %s762_s18 }
  0x42   : > { %v261_v26 = vadd.f32 %v260_v22, %v259_v18  ;;  %p765_p0 = pneg %p764_p11 }
  0x43   : > { %v253_v21 = vrot.slane %v252_v17, 2  ;;  %v247_v24 = vadd.f32 %v246_v20, %v245_v16  ;;  %v268_v27 = vadd.f32 %v267_v23, %v266_v19  ;;  %p771_p3 = por %p770_p13, %p769_p7 }
  0x44   : > { %v262_v30 = vrot.slane %v261_v26, 1 }
  0x45   : > { %v254_v25 = vadd.f32 %v253_v21, %v252_v17  ;;  %v248_v28 = vrot.slane %v247_v24, 1  ;;  %v269_v31 = vrot.slane %v268_v27, 1  ;;  %p772_p6 = pnand %p771_p3, %p765_p0 }
  0x46   : > { %v263_v34 = vadd.f32 %v262_v30, %v261_v26 }
  0x47   : > { %v255_v29 = vrot.slane %v254_v25, 1  ;;  %v249_v32 = vadd.f32 %v248_v28, %v247_v24  ;;  %v270_v35 = vadd.f32 %v269_v31, %v268_v27 }
  0x48   : > { %v274_v38 = vmul.f32 0.25, %v263_v34 }
  0x49   : > { %v256_v33 = vadd.f32 %v255_v29, %v254_v25  ;;  %v272_v36 = vmul.f32 0.25, %v249_v32  ;;  %v275_v39 = vmul.f32 0.25, %v270_v35 }
  0x4b   : > { %v273_v37 = vmul.f32 0.25, %v256_v33  ;;  %v281_v41 = vcombine.low %v274_v38, %v275_v39 }
  0x4d   : > { %v280_v40 = vcombine.low %v272_v36, %v273_v37  ;;  %v285_v43 = vsub.f32 %v235_v5, %v281_v41 }
  0x4f   : > { %v284_v42 = vsub.f32 %v234_v4, %v280_v40  ;;  %v287_v45 = vmul.f32 %v285_v43, %v285_v43  ;;  %v370_v40 = vld [vmem:[%s1072_s3] sm:$0xff] }
  0x51   : > { %v286_v44 = vmul.f32 %v284_v42, %v284_v42  ;;  %v291_v47 = vcombine.high %v287_v45, %v287_v45  ;;  %v308_v49 = vsel %vm242_vm0, %v287_v45, 0.0 }
  0x52   : > { %v309_v53 = vrot.slane %v308_v49, 4 }
  0x53   : > { %v290_v46 = vcombine.high %v286_v44, %v286_v44  ;;  %v294_v48 = vsel %vm242_vm0, %v286_v44, 0.0  ;;  %v315_v52 = vsel %vm242_vm0, %v291_v47, 0.0 }
  0x54   : > { %v295_v51 = vrot.slane %v294_v48, 4  ;;  %v316_v55 = vrot.slane %v315_v52, 4  ;;  %v310_v57 = vadd.f32 %v309_v53, %v308_v49 }
  0x55   : > { %v301_v50 = vsel %vm242_vm0, %v290_v46, 0.0 }
  0x56   : > { %v302_v54 = vrot.slane %v301_v50, 4  ;;  %v296_v56 = vadd.f32 %v295_v51, %v294_v48  ;;  %v317_v59 = vadd.f32 %v316_v55, %v315_v52  ;;  %v311_v61 = vrot.slane %v310_v57, 2 }
  0x58   : > { %v303_v58 = vadd.f32 %v302_v54, %v301_v50  ;;  %v297_v60 = vrot.slane %v296_v56, 2  ;;  %v318_v63 = vrot.slane %v317_v59, 2  ;;  %v312_v1 = vadd.f32 %v311_v61, %v310_v57 }
  0x5a   : > { %v304_v62 = vrot.slane %v303_v58, 2  ;;  %v298_v0 = vadd.f32 %v297_v60, %v296_v56  ;;  %v319_v3 = vadd.f32 %v318_v63, %v317_v59  ;;  %v313_v5 = vrot.slane %v312_v1, 1 }
  0x5c   : > { %v305_v2 = vadd.f32 %v304_v62, %v303_v58  ;;  %v299_v4 = vrot.slane %v298_v0, 1  ;;  %v320_v7 = vrot.slane %v319_v3, 1  ;;  %v314_v9 = vadd.f32 %v313_v5, %v312_v1 }
  0x5e   : > { %v306_v6 = vrot.slane %v305_v2, 1  ;;  %v300_v8 = vadd.f32 %v299_v4, %v298_v0  ;;  %v321_v11 = vadd.f32 %v320_v7, %v319_v3  ;;  %v324_v13 = vmul.f32 0.25, %v314_v9 }
  0x60   : > { %v307_v10 = vadd.f32 %v306_v6, %v305_v2  ;;  %v322_v12 = vmul.f32 0.25, %v300_v8  ;;  %v325_v15 = vmul.f32 0.25, %v321_v11  ;;  %v328_v17 = vadd.f32 1e-06, %v324_v13 }
  0x62   : > { %v323_v14 = vmul.f32 0.25, %v307_v10  ;;  %v326_v16 = vadd.f32 1e-06, %v322_v12  ;;  %v329_v19 = vadd.f32 1e-06, %v325_v15 }
  0x64   : > { %v327_v18 = vadd.f32 1e-06, %v323_v14  ;;  %724 = vrsqrt.f32 %v326_v16 }
  0x65   : > { %726 = vrsqrt.f32 %v328_v17 }
  0x66   : > { %728 = vrsqrt.f32 %v327_v18 }
  0x67   : > { %730 = vrsqrt.f32 %v329_v19 }
  0x6e   : > { %v725_v20 = vpop.eup %724 }
  0x6f   : > { %v727_v21 = vpop.eup %726 }
  0x70   : > { %v729_v22 = vpop.eup %728 }
  0x71   : > { %v731_v23 = vpop.eup %730  ;;  %v338_v24 = vcombine.low %v725_v20, %v729_v22 }
  0x72   : > { %v339_v25 = vcombine.low %v727_v21, %v731_v23 }
  0x73   : > { %v342_v26 = vmul.f32 %v338_v24, %v284_v42 }
  0x74   : > { %v343_v27 = vmul.f32 %v339_v25, %v285_v43 }
  0x75   : > { %v352_v28 = vcombine.high %v342_v26, %v342_v26 }
  0x76   : > { %v353_v29 = vcombine.high %v343_v27, %v343_v27 }
  0xba   : > { %v348_v30 = vpop.permute.xlu0 %347 }
  0xbb   : > { %v356_v31 = vmul.f32 %v348_v30, %v342_v26  ;;  %v358_v32 = vmul.f32 %v348_v30, %v343_v27  ;;  %v357_v33 = vmul.f32 %v352_v28, %v348_v30  ;;  %v359_v34 = vmul.f32 %v353_v29, %v348_v30 }
  0xbe   : > { %v364_v35 = vpop.permute.xlu0 %363 }
  0xbf   : > { %v366_v36 = vadd.f32 %v364_v35, %v356_v31  ;;  %v368_v37 = vadd.f32 %v364_v35, %v358_v32  ;;  %v367_v38 = vadd.f32 %v364_v35, %v357_v33  ;;  %v369_v39 = vadd.f32 %v364_v35, %v359_v34 }
  0xc1   : > { %644 = vmatprep.subr.msk.mxu0 %vm242_vm0, %v367_v38  ;;  %647 = vmatprep.subr.msk.mxu1 %vm242_vm0, %v369_v39 }
  0xc2   : > { %645 = vmatpush1.msk.msra.mxu0 %vm242_vm0, %v366_v36  ;;  %648 = vmatpush1.msk.msra.mxu1 %vm242_vm0, %v368_v37 }
  0xc3   : > { %646 = vmatmul.mubr.msk.f32.vlgmr.msra.gmra.mrb[0].mxu0 %vm371_vm1, %v370_v40  ;;  %649 = vmatmul.mubr.msk.f32.vlgmr.msra.gmra.mrb[0].mxu1 %vm371_vm1, %v370_v40 }
 0x196   : > { %v453_v41 = vpop.f32.mrb[0].mxu0  ;;  %v524_v42 = vpop.f32.mrb[0].mxu1 }
 0x197   : > { %529 = vst [vmem:[%s231_s6] sm:$0xff] %v453_v41  ;;  %531 = vst [vmem:[%s231_s6 + $0x10] sm:$0xff] %v524_v42  ;;  %v455_v43 = vpop.f32.mrb[1].mxu0  ;;  %v526_v44 = vpop.f32.mrb[1].mxu1 }
 0x198   : > { %530 = vst [vmem:[%s231_s6 + $0x8] sm:$0xff] %v455_v43  ;;  %532 = vst [vmem:[%s231_s6 + $0x18] sm:$0xff] %v526_v44 }
 0x199   : > { %775 = shalt.err (!%p772_p6)
}
 0x19a   : > { %s776_s11 = scalar_lea.hbm %s1022_s21, 512  ;;  %s780_s27 = scalar_lea.hbm %s1073_s4, 1024 }
 0x19b   : > { %p777_p4 = scmp.ne.s32.totalorder %s1022_s21, %s776_s11  ;;  %p781_p1 = scmp.lt.u32.totalorder %s1022_s21, %s1073_s4 }
 0x19c   : > { %p782_p2 = scmp.lt.u32.totalorder %s780_s27, %s776_s11  ;;  %p784_p8 = scmp.lt.u32.totalorder %s776_s11, %s1022_s21 }
 0x19d   : > { %p778_p10 = pnand %p777_p4, %p1082_p9 }
 0x19e   : > { %p783_p5 = por %p782_p2, %p781_p1 }
 0x19f   : > { %p779_p12 = pneg %p778_p10 }
 0x1a0   : > { %p785_p11 = por %p784_p8, %p783_p5 }
 0x1a2   : > { %p786_p0 = pnand %p785_p11, %p779_p12 }
 0x1a4   : > { %789 = shalt.err (!%p786_p0)
}
 0x1a5   : > { %659 = dma.vmem_to_hbm [thread:$0]  (%p1082_p9), %s1017_s5, 512, %s1022_s21, %s534_s22  }
 0x1a6 PF: > { %s562_s6 = sand.u32 1, %s824_s15   ;;  %p1083_p7 = scmp.ne.s32.totalorder %s1078_s30, 0 }
 0x1a7   : > { %p1084_p13 = scmp.ge.s32.totalorder %s844_s20, 2  ;;  %s563_s7 = scalar_lea.sflag [#allocation4], %s562_s6 }
 0x1a9   : > { %p666_p3 = pnand %p1084_p13, %p1083_p7 }
 0x1ab   : > { %819 = dma.done.wait (!%p666_p3), %s563_s7, 512  }
 0x1ac   : > { %821 = vsyncadd (!%p666_p3), %s563_s7, 4294966784  ;;  %s20_s20 = sadd.s32 1, %s844_s20   ;;  %s1085_s15 = smov %s828_s16 }
 0x1ad   : > { %p17_p6 = scmp.ge.s32.totalorder %s20_s20, 4   ;;  %s1086_s16 = smov %s832_s17 }
 0x1ae   : > { %s1087_s17 = smov %s931_s29  ;;  %s1088_s18 = smov %s840_s19 }
 0x1af   : > { %s1089_s19 = smov %s1091_s23  ;;  %19 = sbr.rel (!%p17_p6) target bundleno = 6 (0x6), region = 81 }
 0x1b6   :  { %568 = vsyncpa [#allocation3], 1 }
 0x1b7   :  { %570 = vsyncpa [#allocation3 + $0x1], 1 }
 0x1b8   :  { %571 = vsyncpa [#allocation4], 1 }
 0x1b9   :  { %573 = vsyncpa [#allocation4 + $0x1], 1 }

</bundles_post_ra>
